<compile_context>
chip_gen: v5e
topology: v5e:2x2
jax: 0.10.0
libtpu: 0.0.40
codegen_flags: <defaults>
</compile_context>

<pallas_src>
import functools

import jax
import jax.numpy as jnp
from jax.experimental import pallas as pl
from jax.experimental.pallas import tpu as pltpu


def _round_up(x, m):
    return (x + m - 1) // m * m


def _vmem_capacity_bytes():
    """Per-core VMEM capacity; conservative 64 MiB fallback (v7x per-TC)."""
    try:
        return int(pltpu.get_tpu_info().vmem_capacity_bytes)
    except Exception:
        return 64 * 1024 * 1024


def _mlp_kernel(x_ref, w1_ref, b1_ref, dw_ref, dwb_ref, w2_ref, b2_ref, o_ref,
                h_sc, *, tile_rows, width, linear, approx_gelu):
    """One (batch, row-tile) grid step.

    x_ref : (1, 1, Cin, L)  flattened (TH+2, W) input window, L = roundup((TH+2)*W, 128)
    w1    : (hidden, Cin)   b1 : (hidden, 1) f32   dw : (hidden, 9)  dwb : (hidden, 1)
    w2    : (Cout, hidden)  b2 : (Cout, 1) f32
    o_ref : (1, Cout, TH*W)
    h_sc  : (hidden, L) VMEM scratch in the compute dtype
    """
    TH, W = tile_rows, width
    THW = TH * W
    L = x_ref.shape[-1]
    t = pl.program_id(1)

    xw = x_ref[0, 0]                                             # (Cin, L)

    # ---- fc1: 1x1 conv == channel matmul, spatial on the lane axis (MXU) ----
    h = jnp.dot(w1_ref[...], xw, preferred_element_type=jnp.float32)  # (hidden, L)
    h = h + b1_ref[...]                                          # lane-broadcast bias
    if linear:
        h = jnp.maximum(h, 0.0)                                  # ReLU when linear=True
    h_sc[...] = h.astype(h_sc.dtype)

    # Halo rows at the image top/bottom must behave like conv zero padding
    # (i.e. be zero *after* fc1 + bias).  pl.when-gated so interior tiles skip it.
    @pl.when(t == 0)
    def _():
        h_sc[:, 0:W] = jnp.zeros((h_sc.shape[0], W), h_sc.dtype)

    @pl.when(t == pl.num_programs(1) - 1)
    def _():
        h_sc[:, (TH + 1) * W:(TH + 2) * W] = jnp.zeros((h_sc.shape[0], W), h_sc.dtype)

    h = h_sc[...]                                                # compute dtype

    # ---- depthwise 3x3 conv (pad=1, groups=hidden) ----
    # Column-masked neighbours, built once on the full extended window:
    col = jax.lax.broadcasted_iota(jnp.int32, (1, L), 1) % W
    hC = h
    hL = jnp.where(col != 0, pltpu.roll(h, 1, axis=1), 0.0)        # left neighbour
    hR = jnp.where(col != W - 1, pltpu.roll(h, L - 1, axis=1), 0.0)  # right neighbour

    def tap(src, row_off):
        # Output position f reads the extended window at f + row_off (+/-1 folded
        # into hL/hR).  row_off is a multiple of W so the column masks stay valid.
        if row_off == 0:
            return src[:, :THW]
        return pltpu.roll(src, (-row_off) % L, axis=1)[:, :THW]

    dwm = dw_ref[...]                                            # (hidden, 9)
    acc = dwb_ref[...]                                           # bias-initialised acc
    for j, row_off in enumerate((0, W, 2 * W)):                  # oy = -1, 0, +1
        for i, src in enumerate((hL, hC, hR)):                   # ox = -1, 0, +1
            acc = acc + dwm[:, 3 * j + i:3 * j + i + 1] * tap(src, row_off)

    # ---- GELU (tanh-approx -> EUP by default; exact erf optional) ----
    g = jax.nn.gelu(acc, approximate=approx_gelu)

    # ---- fc2: 1x1 conv == channel matmul; single lane-dense store ----
    out = jnp.dot(w2_ref[...], g.astype(w2_ref.dtype),
                  preferred_element_type=jnp.float32)            # (Cout, THW)
    out = out + b2_ref[...]
    o_ref[0] = out.astype(o_ref.dtype)


def _pick_tile_rows(N, H, W, cin, hidden, cout, in_itemsize, comp_itemsize,
                    budget_bytes):
    """Largest row-tile TH dividing H with TH*W lane-aligned that fits the budget.

    If the batch is odd, prefer a tile count T that keeps N*T even so the two
    v7x TensorCores stay balanced (no-op on single-TC v5e/v6e).
    """
    cands = [d for d in range(1, H + 1) if H % d == 0 and (d * W) % 128 == 0]
    if not cands:
        return H                       # single full-height tile (still correct)

    def fits(th):
        l = _round_up((th + 2) * W, 128)
        est = (2 * cin * l * in_itemsize            # double-buffered input windows
               + 2 * cout * th * W * 4              # double-buffered output tiles
               + hidden * l * comp_itemsize         # h scratch
               + 6 * hidden * l * comp_itemsize)    # live hL/hC/hR/acc intermediates
        return est <= budget_bytes

    fitting = [th for th in sorted(cands, reverse=True) if fits(th)]
    if not fitting:
        return min(cands)
    if N % 2 == 0:
        return fitting[0]
    for th in fitting:                 # N odd: prefer even T = H // th
        if (H // th) % 2 == 0:
            return th
    return fitting[0]


def mlp_pallas(x, params, *, linear=False, tile_rows=None,
               matmul_dtype=jnp.float32, compute_dtype=jnp.float32,
               approx_gelu=True, vmem_capacity_bytes=None):
    """x: (N, Cin, H, W) NCHW.  Returns (N, Cout, H, W) NCHW.

    matmul_dtype : MXU input dtype (bf16 valid on all generations, f32 accumulate).
    compute_dtype: depthwise/GELU intermediate dtype (bf16 recommended on v6e/v7x).
    approx_gelu  : tanh-approx GELU (EUP) by default; False gives torch's erf GELU.
    """
    w1, b1, dw, dwb, w2, b2 = params
    N, Cin, H, W = x.shape
    hidden = b1.shape[0]
    Cout = b2.shape[0]
    md = jnp.dtype(matmul_dtype)
    cd = jnp.dtype(compute_dtype)

    vmem_cap = (int(vmem_capacity_bytes) if vmem_capacity_bytes
                else _vmem_capacity_bytes())

    TH = tile_rows if tile_rows is not None else _pick_tile_rows(
        N, H, W, Cin, hidden, Cout, md.itemsize, cd.itemsize,
        budget_bytes=int(0.45 * vmem_cap))
    if H % TH != 0:
        raise ValueError(f"tile_rows={TH} must divide H={H}")
    if TH != H and (TH * W) % 128 != 0:
        raise ValueError("tile_rows*W must be a multiple of 128 (or tile_rows == H)")
    T = H // TH
    THW = TH * W
    L = _round_up((TH + 2) * W, 128)

    # Wrapper-side prep: overlapping (TH+2)-row windows with a 1-row halo on the
    # small Cin-channel input; the large hidden-channel intermediates never
    # touch HBM.  No NCHW<->NHWC transposes anywhere.
    xp = jnp.pad(x, ((0, 0), (0, 0), (1, 1), (0, 0)))            # (N, Cin, H+2, W)
    windows = jnp.stack(
        [xp[:, :, i * TH:i * TH + TH + 2, :] for i in range(T)], axis=1)
    x_ext = windows.reshape(N, T, Cin, (TH + 2) * W)
    x_ext = jnp.pad(x_ext, ((0, 0), (0, 0), (0, 0), (0, L - (TH + 2) * W)))
    x_ext = x_ext.astype(md)

    w1_p = w1.reshape(hidden, Cin).astype(md)
    w2_p = w2.reshape(Cout, hidden).astype(md)
    dw_p = dw.reshape(hidden, 9).astype(cd)
    dwb_p = dwb.reshape(hidden, 1).astype(cd)
    b1_p = b1.reshape(hidden, 1).astype(jnp.float32)
    b2_p = b2.reshape(Cout, 1).astype(jnp.float32)

    kernel = functools.partial(_mlp_kernel, tile_rows=TH, width=W,
                               linear=linear, approx_gelu=approx_gelu)

    # VMEM ceiling derived from the actual per-core capacity (75% cap leaves
    # headroom for compiler-internal scratch — important on v7x's 64 MiB/TC).
    vmem_est = (2 * Cin * L * md.itemsize
                + 2 * Cout * THW * x.dtype.itemsize
                + 2 * (hidden * Cin + Cout * hidden) * md.itemsize
                + 2 * (hidden * 9 + 2 * hidden + Cout) * 4
                + hidden * L * cd.itemsize            # h scratch
                + 6 * hidden * L * cd.itemsize)       # live intermediates
    vmem_limit = int(min(max(2 * vmem_est, 32 * 1024 * 1024),
                         int(0.75 * vmem_cap)))

    param_bytes = sum(int(p.size) * p.dtype.itemsize
                      for p in (w1_p, b1_p, dw_p, dwb_p, w2_p, b2_p))
    cost = pl.CostEstimate(
        flops=int(2 * N * H * W * (Cin * hidden + hidden * Cout)
                  + 18 * N * H * W * hidden),
        transcendentals=int(N * H * W * hidden),
        bytes_accessed=int(int(x_ext.size) * x_ext.dtype.itemsize
                           + N * Cout * H * W * x.dtype.itemsize + param_bytes),
    )

    # TODO(synk): for very large resident weights on v7x, single-buffering the
    # six constant-index operands (pipeline_mode=pl.Buffered(1)) reclaims a few
    # MiB of VMEM; omitted here since the demo weights are tiny.
    out_flat = pl.pallas_call(
        kernel,
        out_shape=jax.ShapeDtypeStruct((N, Cout, H * W), x.dtype),
        grid_spec=pltpu.PrefetchScalarGridSpec(
            num_scalar_prefetch=0,
            grid=(N, T),
            in_specs=[
                pl.BlockSpec((1, 1, Cin, L), lambda n, t: (n, t, 0, 0)),
                pl.BlockSpec((hidden, Cin), lambda n, t: (0, 0)),
                pl.BlockSpec((hidden, 1), lambda n, t: (0, 0)),
                pl.BlockSpec((hidden, 9), lambda n, t: (0, 0)),
                pl.BlockSpec((hidden, 1), lambda n, t: (0, 0)),
                pl.BlockSpec((Cout, hidden), lambda n, t: (0, 0)),
                pl.BlockSpec((Cout, 1), lambda n, t: (0, 0)),
            ],
            out_specs=pl.BlockSpec((1, Cout, THW), lambda n, t: (n, 0, t)),
            scratch_shapes=[pltpu.VMEM((hidden, L), cd)],
        ),
        compiler_params=pltpu.CompilerParams(
            dimension_semantics=("parallel", "parallel"),
            vmem_limit_bytes=vmem_limit,
        ),
        cost_estimate=cost,
    )(x_ext, w1_p, b1_p, dw_p, dwb_p, w2_p, b2_p)

    return out_flat.reshape(N, Cout, H, W)


def mlp_reference(x, params, *, linear=False, approx_gelu=False):
    """Pure-JAX NCHW reference with exact PyTorch-module semantics."""
    w1, b1, dw, dwb, w2, b2 = params
    N, Cin, H, W = x.shape
    hidden = b1.shape[0]
    Cout = b2.shape[0]
    w1m = w1.reshape(hidden, Cin)
    w2m = w2.reshape(Cout, hidden)
    dwm = dw.reshape(hidden, 3, 3)

    h = jnp.einsum('oc,nchw->nohw', w1m, x) + b1.reshape(1, hidden, 1, 1)
    if linear:
        h = jnp.maximum(h, 0.0)
    hp = jnp.pad(h, ((0, 0), (0, 0), (1, 1), (1, 1)))
    acc = jnp.broadcast_to(dwb.reshape(1, hidden, 1, 1), (N, hidden, H, W))
    for ky in range(3):
        for kx in range(3):
            acc = acc + (dwm[:, ky, kx].reshape(1, hidden, 1, 1)
                         * hp[:, :, ky:ky + H, kx:kx + W])
    g = jax.nn.gelu(acc, approximate=approx_gelu)
    out = jnp.einsum('oc,nchw->nohw', w2m, g) + b2.reshape(1, Cout, 1, 1)
    return out


def init_params(key, in_features, hidden_features, out_features):
    """Synthetic params in PyTorch-equivalent layouts.

      fc1.weight    (hidden, in, 1, 1)  -> (hidden, in)
      fc1.bias      (hidden,)
      dwconv.weight (hidden, 1, 3, 3)   -> (hidden, 9)
      dwconv.bias   (hidden,)
      fc2.weight    (out, hidden, 1, 1) -> (out, hidden)
      fc2.bias      (out,)
    """
    k1, k2, k3, k4, k5, k6 = jax.random.split(key, 6)
    w1 = jax.random.normal(k1, (hidden_features, in_features), jnp.float32) * 0.1
    b1 = jax.random.normal(k2, (hidden_features,), jnp.float32) * 0.05
    dw = jax.random.normal(k3, (hidden_features, 9), jnp.float32) * 0.1
    dwb = jax.random.normal(k4, (hidden_features,), jnp.float32) * 0.05
    w2 = jax.random.normal(k5, (out_features, hidden_features), jnp.float32) * 0.1
    b2 = jax.random.normal(k6, (out_features,), jnp.float32) * 0.05
    return (w1, b1, dw, dwb, w2, b2)


if __name__ == "__main__":
    key = jax.random.PRNGKey(0)
    kx, kp = jax.random.split(key)

    N, Cin, H, W = 2, 4, 16, 16
    hidden = 8
    Cout = Cin                     # out_features defaults to in_features

    x = jax.random.normal(kx, (N, Cin, H, W), jnp.float32)
    params = init_params(kp, Cin, hidden, Cout)

    # Default performance path: f32, tanh-GELU (EUP), generation-aware auto tiling.
    out = jax.block_until_ready(mlp_pallas(x, params))
    ref = mlp_reference(x, params, approx_gelu=True)
    assert out.shape == (N, Cout, H, W)
    assert jnp.allclose(out, ref, atol=1e-4, rtol=1e-4), "mismatch (default path)"

    # linear=True path with exact-erf GELU (torch default numerics), 2 row tiles
    # per image (exercises the pl.when halo gating on first/last tiles).
    out_lin = jax.block_until_ready(
        mlp_pallas(x, params, linear=True, approx_gelu=False, tile_rows=8))
    ref_lin = mlp_reference(x, params, linear=True, approx_gelu=False)
    assert jnp.allclose(out_lin, ref_lin, atol=1e-4, rtol=1e-4), "mismatch (linear path)"

    # bf16 fast path (v6e/v7x): bf16 MXU matmuls + bf16 depthwise/GELU intermediates.
    out_fast = jax.block_until_ready(
        mlp_pallas(x, params, tile_rows=8,
                   matmul_dtype=jnp.bfloat16, compute_dtype=jnp.bfloat16))
    ref_fast = mlp_reference(x, params, approx_gelu=True)
    assert jnp.allclose(out_fast, ref_fast, atol=5e-2, rtol=5e-2), "mismatch (bf16 path)"

    print("KERNEL_OK")
</pallas_src>

<mosaic_0001>
module attributes {stable_mosaic.version = 11 : i64} {
  func.func @_mlp_kernel(%arg0: i32, %arg1: i32, %arg2: memref<1x1x4x384xf32, #tpu.memory_space<vmem>>, %arg3: memref<8x4xf32, #tpu.memory_space<vmem>>, %arg4: memref<8x1xf32, #tpu.memory_space<vmem>>, %arg5: memref<8x9xf32, #tpu.memory_space<vmem>>, %arg6: memref<8x1xf32, #tpu.memory_space<vmem>>, %arg7: memref<4x8xf32, #tpu.memory_space<vmem>>, %arg8: memref<4x1xf32, #tpu.memory_space<vmem>>, %arg9: memref<1x4x256xf32, #tpu.memory_space<vmem>>, %arg10: memref<8x384xf32, #tpu.memory_space<vmem>>) attributes {dimension_semantics = [#tpu.dimension_semantics<parallel>, #tpu.dimension_semantics<parallel>], iteration_bounds = array<i64: 2, 1>, scalar_prefetch = 0 : i64, scratch_operands = 1 : i64, tpu.core_type = #tpu.core_type<tc>, window_params = [{transform_indices = @transform_0, window_bounds = array<i64: 1, 1, 4, 384>}, {pipeline_mode = #tpu.pipeline_mode<synchronous>, transform_indices = @transform_1, window_bounds = array<i64: 8, 4>}, {pipeline_mode = #tpu.pipeline_mode<synchronous>, transform_indices = @transform_2, window_bounds = array<i64: 8, 1>}, {pipeline_mode = #tpu.pipeline_mode<synchronous>, transform_indices = @transform_3, window_bounds = array<i64: 8, 9>}, {pipeline_mode = #tpu.pipeline_mode<synchronous>, transform_indices = @transform_4, window_bounds = array<i64: 8, 1>}, {pipeline_mode = #tpu.pipeline_mode<synchronous>, transform_indices = @transform_5, window_bounds = array<i64: 4, 8>}, {pipeline_mode = #tpu.pipeline_mode<synchronous>, transform_indices = @transform_6, window_bounds = array<i64: 4, 1>}, {transform_indices = @transform_7, window_bounds = array<i64: 1, 4, 256>}]} {
    %c0 = arith.constant 0 : index
    %c0_0 = arith.constant 0 : index
    %c0_1 = arith.constant 0 : index
    %c0_2 = arith.constant 0 : index
    %0 = vector.load %arg2[%c0, %c0_0, %c0_1, %c0_2] : memref<1x1x4x384xf32, #tpu.memory_space<vmem>>, vector<1x1x4x384xf32>
    %1 = vector.shape_cast %0 : vector<1x1x4x384xf32> to vector<4x384xf32>
    %c0_3 = arith.constant 0 : index
    %c0_4 = arith.constant 0 : index
    %2 = vector.load %arg3[%c0_3, %c0_4] : memref<8x4xf32, #tpu.memory_space<vmem>>, vector<8x4xf32>
    %cst = arith.constant dense<0.000000e+00> : vector<8x384xf32>
    %3 = tpu.matmul %2, %1, %cst {dimension_numbers = #tpu.dot_dimension_numbers<[1], [0], [0], [1], [0, 0, 1, 1], [], []>} : vector<8x4xf32>, vector<4x384xf32>, vector<8x384xf32> -> vector<8x384xf32>
    %c0_5 = arith.constant 0 : index
    %c0_6 = arith.constant 0 : index
    %4 = vector.load %arg4[%c0_5, %c0_6] : memref<8x1xf32, #tpu.memory_space<vmem>>, vector<8x1xf32>
    %5 = vector.broadcast %4 : vector<8x1xf32> to vector<8x384xf32>
    %6 = arith.addf %3, %5 : vector<8x384xf32>
    %c0_7 = arith.constant 0 : index
    %c0_8 = arith.constant 0 : index
    %7 = vector.load %arg10[%c0_7, %c0_8] : memref<8x384xf32, #tpu.memory_space<vmem>>, vector<8x384xf32>
    tpu.vector_store %arg10[%c0_7, %c0_8], %6 {strides = array<i32>} : memref<8x384xf32, #tpu.memory_space<vmem>>, vector<8x384xf32>,
    %c0_i32 = arith.constant 0 : i32
    %8 = arith.cmpi eq, %arg1, %c0_i32 : i32
    %9 = arith.extui %8 : i1 to i32
    %c0_i32_9 = arith.constant 0 : i32
    %10 = arith.cmpi ne, %9, %c0_i32_9 : i32
    scf.if %10 {
      %cst_42 = arith.constant 0.000000e+00 : f32
      %121 = vector.broadcast %cst_42 : f32 to vector<8x16xf32>
      %c0_43 = arith.constant 0 : index
      %c0_44 = arith.constant 0 : index
      %122 = vector.load %arg10[%c0_43, %c0_44] : memref<8x384xf32, #tpu.memory_space<vmem>>, vector<8x16xf32>
      tpu.vector_store %arg10[%c0_43, %c0_44], %121 {strides = array<i32>} : memref<8x384xf32, #tpu.memory_space<vmem>>, vector<8x16xf32>,
    } else {
    }
    %c0_i32_10 = arith.constant 0 : i32
    %11 = arith.cmpi eq, %arg1, %c0_i32_10 : i32
    %12 = arith.extui %11 : i1 to i32
    %c0_i32_11 = arith.constant 0 : i32
    %13 = arith.cmpi ne, %12, %c0_i32_11 : i32
    scf.if %13 {
      %cst_42 = arith.constant 0.000000e+00 : f32
      %121 = vector.broadcast %cst_42 : f32 to vector<8x16xf32>
      %c0_43 = arith.constant 0 : index
      %c272 = arith.constant 272 : index
      %122 = vector.load %arg10[%c0_43, %c272] : memref<8x384xf32, #tpu.memory_space<vmem>>, vector<8x16xf32>
      tpu.vector_store %arg10[%c0_43, %c272], %121 {strides = array<i32>} : memref<8x384xf32, #tpu.memory_space<vmem>>, vector<8x16xf32>,
    } else {
    }
    %c0_12 = arith.constant 0 : index
    %c0_13 = arith.constant 0 : index
    %14 = vector.load %arg10[%c0_12, %c0_13] : memref<8x384xf32, #tpu.memory_space<vmem>>, vector<8x384xf32>
    %15 = tpu.iota {dimensions = array<i32: 1>} : vector<1x384xi32>
    %c16_i32 = arith.constant 16 : i32
    %c0_i32_14 = arith.constant 0 : i32
    %16 = arith.cmpi eq, %c16_i32, %c0_i32_14 : i32
    %c1_i32 = arith.constant 1 : i32
    %17 = arith.select %16, %c1_i32, %c16_i32 : i32
    %18 = vector.broadcast %17 : i32 to vector<1x384xi32>
    %19 = arith.remsi %15, %18 : vector<1x384xi32>
    %c0_i32_15 = arith.constant 0 : i32
    %20 = vector.broadcast %c0_i32_15 : i32 to vector<1x384xi32>
    %21 = arith.cmpi ne, %19, %20 : vector<1x384xi32>
    %c0_i32_16 = arith.constant 0 : i32
    %22 = vector.broadcast %c0_i32_16 : i32 to vector<1x384xi32>
    %23 = arith.cmpi slt, %19, %22 : vector<1x384xi32>
    %c0_i32_17 = arith.constant 0 : i32
    %24 = arith.cmpi slt, %17, %c0_i32_17 : i32
    %25 = vector.broadcast %24 : i1 to vector<1x384xi1>
    %26 = vector.broadcast %25 : vector<1x384xi1> to vector<1x384xi1>
    %27 = arith.xori %23, %26 : vector<1x384xi1>
    %28 = arith.andi %27, %21 : vector<1x384xi1>
    %29 = vector.broadcast %17 : i32 to vector<1x384xi32>
    %30 = arith.addi %19, %29 : vector<1x384xi32>
    %31 = arith.select %28, %30, %19 : vector<1x384xi1>, vector<1x384xi32>
    %c0_i32_18 = arith.constant 0 : i32
    %32 = vector.broadcast %c0_i32_18 : i32 to vector<1x384xi32>
    %33 = arith.cmpi ne, %31, %32 : vector<1x384xi32>
    %c1_i32_19 = arith.constant 1 : i32
    %34 = tpu.dynamic_rotate %14 by %c1_i32_19 dim 1 : vector<8x384xf32>, i32 -> vector<8x384xf32>
    %cst_20 = arith.constant 0.000000e+00 : f32
    %35 = vector.shape_cast %33 : vector<1x384xi1> to vector<1x384xi1>
    %36 = vector.broadcast %35 : vector<1x384xi1> to vector<8x384xi1>
    %37 = vector.broadcast %cst_20 : f32 to vector<8x384xf32>
    %38 = arith.select %36, %34, %37 : vector<8x384xi1>, vector<8x384xf32>
    %c15_i32 = arith.constant 15 : i32
    %39 = vector.broadcast %c15_i32 : i32 to vector<1x384xi32>
    %40 = arith.cmpi ne, %31, %39 : vector<1x384xi32>
    %c383_i32 = arith.constant 383 : i32
    %41 = tpu.dynamic_rotate %14 by %c383_i32 dim 1 : vector<8x384xf32>, i32 -> vector<8x384xf32>
    %cst_21 = arith.constant 0.000000e+00 : f32
    %42 = vector.shape_cast %40 : vector<1x384xi1> to vector<1x384xi1>
    %43 = vector.broadcast %42 : vector<1x384xi1> to vector<8x384xi1>
    %44 = vector.broadcast %cst_21 : f32 to vector<8x384xf32>
    %45 = arith.select %43, %41, %44 : vector<8x384xi1>, vector<8x384xf32>
    %c0_22 = arith.constant 0 : index
    %c0_23 = arith.constant 0 : index
    %46 = vector.load %arg5[%c0_22, %c0_23] : memref<8x9xf32, #tpu.memory_space<vmem>>, vector<8x9xf32>
    %c0_24 = arith.constant 0 : index
    %c0_25 = arith.constant 0 : index
    %47 = vector.load %arg6[%c0_24, %c0_25] : memref<8x1xf32, #tpu.memory_space<vmem>>, vector<8x1xf32>
    %48 = vector.extract_strided_slice %46 {offsets = [0, 0], sizes = [8, 1], strides = [1, 1]} : vector<8x9xf32> to vector<8x1xf32>
    %49 = vector.extract_strided_slice %38 {offsets = [0, 0], sizes = [8, 256], strides = [1, 1]} : vector<8x384xf32> to vector<8x256xf32>
    %50 = vector.broadcast %48 : vector<8x1xf32> to vector<8x256xf32>
    %51 = arith.mulf %50, %49 : vector<8x256xf32>
    %52 = vector.broadcast %47 : vector<8x1xf32> to vector<8x256xf32>
    %53 = arith.addf %52, %51 : vector<8x256xf32>
    %54 = vector.extract_strided_slice %46 {offsets = [0, 1], sizes = [8, 1], strides = [1, 1]} : vector<8x9xf32> to vector<8x1xf32>
    %55 = vector.extract_strided_slice %14 {offsets = [0, 0], sizes = [8, 256], strides = [1, 1]} : vector<8x384xf32> to vector<8x256xf32>
    %56 = vector.broadcast %54 : vector<8x1xf32> to vector<8x256xf32>
    %57 = arith.mulf %56, %55 : vector<8x256xf32>
    %58 = arith.addf %53, %57 : vector<8x256xf32>
    %59 = vector.extract_strided_slice %46 {offsets = [0, 2], sizes = [8, 1], strides = [1, 1]} : vector<8x9xf32> to vector<8x1xf32>
    %60 = vector.extract_strided_slice %45 {offsets = [0, 0], sizes = [8, 256], strides = [1, 1]} : vector<8x384xf32> to vector<8x256xf32>
    %61 = vector.broadcast %59 : vector<8x1xf32> to vector<8x256xf32>
    %62 = arith.mulf %61, %60 : vector<8x256xf32>
    %63 = arith.addf %58, %62 : vector<8x256xf32>
    %64 = vector.extract_strided_slice %46 {offsets = [0, 3], sizes = [8, 1], strides = [1, 1]} : vector<8x9xf32> to vector<8x1xf32>
    %c368_i32 = arith.constant 368 : i32
    %65 = tpu.dynamic_rotate %38 by %c368_i32 dim 1 : vector<8x384xf32>, i32 -> vector<8x384xf32>
    %66 = vector.extract_strided_slice %65 {offsets = [0, 0], sizes = [8, 256], strides = [1, 1]} : vector<8x384xf32> to vector<8x256xf32>
    %67 = vector.broadcast %64 : vector<8x1xf32> to vector<8x256xf32>
    %68 = arith.mulf %67, %66 : vector<8x256xf32>
    %69 = arith.addf %63, %68 : vector<8x256xf32>
    %70 = vector.extract_strided_slice %46 {offsets = [0, 4], sizes = [8, 1], strides = [1, 1]} : vector<8x9xf32> to vector<8x1xf32>
    %c368_i32_26 = arith.constant 368 : i32
    %71 = tpu.dynamic_rotate %14 by %c368_i32_26 dim 1 : vector<8x384xf32>, i32 -> vector<8x384xf32>
    %72 = vector.extract_strided_slice %71 {offsets = [0, 0], sizes = [8, 256], strides = [1, 1]} : vector<8x384xf32> to vector<8x256xf32>
    %73 = vector.broadcast %70 : vector<8x1xf32> to vector<8x256xf32>
    %74 = arith.mulf %73, %72 : vector<8x256xf32>
    %75 = arith.addf %69, %74 : vector<8x256xf32>
    %76 = vector.extract_strided_slice %46 {offsets = [0, 5], sizes = [8, 1], strides = [1, 1]} : vector<8x9xf32> to vector<8x1xf32>
    %c368_i32_27 = arith.constant 368 : i32
    %77 = tpu.dynamic_rotate %45 by %c368_i32_27 dim 1 : vector<8x384xf32>, i32 -> vector<8x384xf32>
    %78 = vector.extract_strided_slice %77 {offsets = [0, 0], sizes = [8, 256], strides = [1, 1]} : vector<8x384xf32> to vector<8x256xf32>
    %79 = vector.broadcast %76 : vector<8x1xf32> to vector<8x256xf32>
    %80 = arith.mulf %79, %78 : vector<8x256xf32>
    %81 = arith.addf %75, %80 : vector<8x256xf32>
    %82 = vector.extract_strided_slice %46 {offsets = [0, 6], sizes = [8, 1], strides = [1, 1]} : vector<8x9xf32> to vector<8x1xf32>
    %c352_i32 = arith.constant 352 : i32
    %83 = tpu.dynamic_rotate %38 by %c352_i32 dim 1 : vector<8x384xf32>, i32 -> vector<8x384xf32>
    %84 = vector.extract_strided_slice %83 {offsets = [0, 0], sizes = [8, 256], strides = [1, 1]} : vector<8x384xf32> to vector<8x256xf32>
    %85 = vector.broadcast %82 : vector<8x1xf32> to vector<8x256xf32>
    %86 = arith.mulf %85, %84 : vector<8x256xf32>
    %87 = arith.addf %81, %86 : vector<8x256xf32>
    %88 = vector.extract_strided_slice %46 {offsets = [0, 7], sizes = [8, 1], strides = [1, 1]} : vector<8x9xf32> to vector<8x1xf32>
    %c352_i32_28 = arith.constant 352 : i32
    %89 = tpu.dynamic_rotate %14 by %c352_i32_28 dim 1 : vector<8x384xf32>, i32 -> vector<8x384xf32>
    %90 = vector.extract_strided_slice %89 {offsets = [0, 0], sizes = [8, 256], strides = [1, 1]} : vector<8x384xf32> to vector<8x256xf32>
    %91 = vector.broadcast %88 : vector<8x1xf32> to vector<8x256xf32>
    %92 = arith.mulf %91, %90 : vector<8x256xf32>
    %93 = arith.addf %87, %92 : vector<8x256xf32>
    %94 = vector.extract_strided_slice %46 {offsets = [0, 8], sizes = [8, 1], strides = [1, 1]} : vector<8x9xf32> to vector<8x1xf32>
    %c352_i32_29 = arith.constant 352 : i32
    %95 = tpu.dynamic_rotate %45 by %c352_i32_29 dim 1 : vector<8x384xf32>, i32 -> vector<8x384xf32>
    %96 = vector.extract_strided_slice %95 {offsets = [0, 0], sizes = [8, 256], strides = [1, 1]} : vector<8x384xf32> to vector<8x256xf32>
    %97 = vector.broadcast %94 : vector<8x1xf32> to vector<8x256xf32>
    %98 = arith.mulf %97, %96 : vector<8x256xf32>
    %99 = arith.addf %93, %98 : vector<8x256xf32>
    %100 = arith.mulf %99, %99 : vector<8x256xf32>
    %101 = arith.mulf %99, %100 : vector<8x256xf32>
    %cst_30 = arith.constant 4.471500e-02 : f32
    %102 = vector.broadcast %cst_30 : f32 to vector<8x256xf32>
    %103 = arith.mulf %102, %101 : vector<8x256xf32>
    %104 = arith.addf %99, %103 : vector<8x256xf32>
    %cst_31 = arith.constant 0.797884583 : f32
    %105 = vector.broadcast %cst_31 : f32 to vector<8x256xf32>
    %106 = arith.mulf %105, %104 : vector<8x256xf32>
    %107 = math.tanh %106 : vector<8x256xf32>
    %cst_32 = arith.constant 1.000000e+00 : f32
    %108 = vector.broadcast %cst_32 : f32 to vector<8x256xf32>
    %109 = arith.addf %108, %107 : vector<8x256xf32>
    %cst_33 = arith.constant 5.000000e-01 : f32
    %110 = vector.broadcast %cst_33 : f32 to vector<8x256xf32>
    %111 = arith.mulf %110, %109 : vector<8x256xf32>
    %112 = arith.mulf %99, %111 : vector<8x256xf32>
    %c0_34 = arith.constant 0 : index
    %c0_35 = arith.constant 0 : index
    %113 = vector.load %arg7[%c0_34, %c0_35] : memref<4x8xf32, #tpu.memory_space<vmem>>, vector<4x8xf32>
    %cst_36 = arith.constant dense<0.000000e+00> : vector<4x256xf32>
    %114 = tpu.matmul %113, %112, %cst_36 {dimension_numbers = #tpu.dot_dimension_numbers<[1], [0], [0], [1], [0, 0, 1, 1], [], []>} : vector<4x8xf32>, vector<8x256xf32>, vector<4x256xf32> -> vector<4x256xf32>
    %c0_37 = arith.constant 0 : index
    %c0_38 = arith.constant 0 : index
    %115 = vector.load %arg8[%c0_37, %c0_38] : memref<4x1xf32, #tpu.memory_space<vmem>>, vector<4x1xf32>
    %116 = vector.broadcast %115 : vector<4x1xf32> to vector<4x256xf32>
    %117 = arith.addf %114, %116 : vector<4x256xf32>
    %c0_39 = arith.constant 0 : index
    %c0_40 = arith.constant 0 : index
    %c0_41 = arith.constant 0 : index
    %118 = vector.load %arg9[%c0_39, %c0_40, %c0_41] : memref<1x4x256xf32, #tpu.memory_space<vmem>>, vector<1x4x256xf32>
    %119 = vector.shape_cast %118 : vector<1x4x256xf32> to vector<4x256xf32>
    %120 = vector.shape_cast %117 : vector<4x256xf32> to vector<1x4x256xf32>
    tpu.vector_store %arg9[%c0_39, %c0_40, %c0_41], %120 {strides = array<i32>} : memref<1x4x256xf32, #tpu.memory_space<vmem>>, vector<1x4x256xf32>,
    return
  }
  func.func @transform_0(%arg0: i32, %arg1: i32) -> (i32, i32, i32, i32) {
    %c0_i32 = arith.constant 0 : i32
    %c0_i32_0 = arith.constant 0 : i32
    %c0_i32_1 = arith.constant 0 : i32
    return %arg0, %arg1, %c0_i32, %c0_i32_0 : i32, i32, i32, i32
  }
  func.func @transform_1(%arg0: i32, %arg1: i32) -> (i32, i32) {
    %c0_i32 = arith.constant 0 : i32
    %c0_i32_0 = arith.constant 0 : i32
    %c0_i32_1 = arith.constant 0 : i32
    return %c0_i32, %c0_i32_0 : i32, i32
  }
  func.func @transform_2(%arg0: i32, %arg1: i32) -> (i32, i32) {
    %c0_i32 = arith.constant 0 : i32
    %c0_i32_0 = arith.constant 0 : i32
    %c0_i32_1 = arith.constant 0 : i32
    return %c0_i32, %c0_i32_0 : i32, i32
  }
  func.func @transform_3(%arg0: i32, %arg1: i32) -> (i32, i32) {
    %c0_i32 = arith.constant 0 : i32
    %c0_i32_0 = arith.constant 0 : i32
    %c0_i32_1 = arith.constant 0 : i32
    return %c0_i32, %c0_i32_0 : i32, i32
  }
  func.func @transform_4(%arg0: i32, %arg1: i32) -> (i32, i32) {
    %c0_i32 = arith.constant 0 : i32
    %c0_i32_0 = arith.constant 0 : i32
    %c0_i32_1 = arith.constant 0 : i32
    return %c0_i32, %c0_i32_0 : i32, i32
  }
  func.func @transform_5(%arg0: i32, %arg1: i32) -> (i32, i32) {
    %c0_i32 = arith.constant 0 : i32
    %c0_i32_0 = arith.constant 0 : i32
    %c0_i32_1 = arith.constant 0 : i32
    return %c0_i32, %c0_i32_0 : i32, i32
  }
  func.func @transform_6(%arg0: i32, %arg1: i32) -> (i32, i32) {
    %c0_i32 = arith.constant 0 : i32
    %c0_i32_0 = arith.constant 0 : i32
    %c0_i32_1 = arith.constant 0 : i32
    return %c0_i32, %c0_i32_0 : i32, i32
  }
  func.func @transform_7(%arg0: i32, %arg1: i32) -> (i32, i32, i32) {
    %c0_i32 = arith.constant 0 : i32
    %c0_i32_0 = arith.constant 0 : i32
    return %arg0, %c0_i32, %arg1 : i32, i32, i32
  }
}

</mosaic_0001>

<bundles_post_ra>
// kernel: tpu_custom_call.1
= control target key start
LH: loop header
LB: loop body
LE: loop exit
PB: predicated region body
PF: predicated region fallthrough
CT: control target
= control target key end

     0   :  { %12 = vsyncpa [#allocation4], 0  ;;  %s1256_s0 = inlined_call_operand.vmem [shape: f32[2,1,4,384], index: 0, kind: input, shape index: {}]   ;;  %s1257_s1 = inlined_call_operand.vmem [shape: f32[8,4], index: 1, kind: input, shape index: {}]   ;;  %s1258_s2 = inlined_call_operand.vmem [shape: f32[8,1], index: 2, kind: input, shape index: {}]   ;;  %s1259_s3 = inlined_call_operand.vmem [shape: f32[8,9], index: 3, kind: input, shape index: {}]   ;;  %s1260_s4 = inlined_call_operand.vmem [shape: f32[8,1], index: 4, kind: input, shape index: {}]   ;;  %s1261_s5 = inlined_call_operand.vmem [shape: f32[4,8], index: 5, kind: input, shape index: {}]   ;;  %s1262_s6 = inlined_call_operand.vmem [shape: f32[4,1], index: 6, kind: input, shape index: {}]   ;;  %s1263_s7 = inlined_call_operand.hbm [shape: f32[2,4,256], index: 7, kind: output, shape index: {}]  }
   0x1   :  { %14 = vsyncpa [#allocation4 + $0x1], 0  ;;  %s1037_s24 = smov 0   ;;  %s1039_s25 = smov 0  }
   0x2   :  { %s1041_s26 = smov 0   ;;  %s1043_s27 = smov 0  }
   0x3   :  { %s1045_s28 = smov 0   ;;  %s1047_s29 = smov 0  }
   0x4 LB: > { %s795_s30 = sadd.s32 4294967295, %s981_s29   ;;  %s796_s8 = sadd.s32 4294967294, %s981_s29   ;;  %s981_s29 = sphi %s1047_s29, %s20_s29   ;;  %s977_s28 = sphi %s1045_s28, %s1270_s28   ;;  %s973_s27 = sphi %s1043_s27, %s1269_s27   ;;  %s969_s26 = sphi %s1041_s26, %s1268_s26   ;;  %s965_s25 = sphi %s1039_s25, %s1267_s25   ;;  %s961_s24 = sphi %s1037_s24, %s1266_s24  }
   0x5   : > { %s32_s9 = sadd.s32 1, %s977_s28  ;;  %s195_s10 = sadd.s32 1, %s969_s26 }
   0x6   : > { %p34_p0 = scmp.ge.s32.totalorder %s32_s9, 2  ;;  %p205_p1 = scmp.ne.s32.totalorder %s969_s26, %s965_s25 }
   0x7   : > { %p206_p2 = scmp.eq.s32.totalorder %s795_s30, 1  ;;  %p211_p3 = scmp.ne.s32.totalorder %s965_s25, %s961_s24 }
   0x8   : > { %s1272_s9 = smov (%p34_p0, %s32_s9), 0  ;;  %p212_p5 = scmp.eq.s32.totalorder %s796_s8, 1 }
   0x9   : > { %p1077_p4 = por %p206_p2, %p205_p1  ;;  %s190_s12 = ssub.s32 %s977_s28, %s1272_s9 }
   0xa   : > { %p799_p6 = scmp.ge.s32.totalorder %s981_s29, 1  ;;  %p193_p7 = scmp.eq.s32.totalorder %s190_s12, 0 }
   0xb   : > { %p1084_p8 = por %p212_p5, %p211_p3  ;;  %p260_p9 = scmp.lt.s32.totalorder %s981_s29, 3 }
   0xc   : > { %s1090_s14 = scalar_select %p193_p7, %s969_s26, %s195_s10  }
   0xd   : > { %p261_p10 = pnand %p799_p6, %p260_p9 }
   0xe   : > { %p296_p11 = scmp.lt.s32.totalorder (!%p261_p10), %s973_s27, 1  ;;  %s991_s15 = smov (!%p261_p10), 127  }
   0xf   : > { %264 = sbr.rel (%p261_p10) target bundleno = 607 (0x25f), region = 48  ;;  %s992_s16 = smov (!%p261_p10), 1  }
  0x10   : > { %s993_s17 = smov (!%p261_p10), 112   ;;  %s994_s18 = smov (!%p261_p10), 96  }
  0x11   : > { %s293_s23 = sand.u32 (!%p261_p10), 1, %s965_s25  }
  0x12   : > { %s800_s30 = sshll.u32 (!%p261_p10), %s293_s23, 3 }
  0x14   : > { %v309_v0 = vld [vmem:[%s1258_s2] sm:$0xff]  ;;  %v983_v1 = vmov 0   ;;  %s297_s19 = scalar_select %p296_p11, %s973_s27, 1  ;;  %v984_v6 = vmov 1   ;;  %v985_v7 = vmov 3   ;;  %v986_v8 = vmov 2  }
  0x15   : > { %886 = vset.pattern.permute.xlu0 %v983_v1  ;;  %888 = vset.pattern.permute.xlu2 %v983_v1  ;;  %v493_v2 = vld [vmem:[%s1260_s4] sm:$0xff]  ;;  %vm327_vm0 = vcmask 1043456   ;;  %vm323_vm1 = vcmask 31744   ;;  %v987_v13 = vmov 4   ;;  %v988_v14 = vmov 6  }
  0x16   : > { %312 = vperm.xlu0 %886, %v309_v0   ;;  %503 = vperm.xlu2 %888, %v493_v2   ;;  %v1105_v3 = vld [vmem:[%s1259_s3] sm:$0xff]  ;;  %s816_s22 = smul.u32 12, %s297_s19  ;;  %v989_v15 = vmov 5   ;;  %vm401_vm2 = vcmask 130048   ;;  %v990_v21 = vmov 0.0   ;;  %vm403_vm3 = vcmask 261248  }
  0x17   : > { %887 = vset.pattern.permute.xlu1 %v983_v1  ;;  %v308_v9 = vld [vmem:[%s1257_s1] sm:$0xff]  ;;  %v995_v26 = vmov 7   ;;  %v408_v30 = vlaneseq  ;;  %v996_v2 = vmov 8   ;;  %vm647_vm14 = vcmask 64512  }
  0x18   : > { %496 = vperm.xlu1 %887, %v1105_v3   ;;  %s304_s8 = scalar_lea.vmem %s1256_s0, %s816_s22 }
  0x19   : > { %v306_v4 = vld [vmem:[%s304_s8] sm:$0xff]  ;;  %v307_v5 = vld [vmem:[%s304_s8 + $0x8] sm:$0xf]  ;;  %v1146_v33 = vand.u32 127, %v408_v30  ;;  %s815_s8 = sshll.u32 %s973_s27, 3  ;;  %s698_s27 = scalar_lea.sflag [#allocation4], %s293_s23 }
  0x1a   : > { %317 = vst [vmem:[#allocation1] ss:$2 sm:$0xff] %v306_v4 }
  0x1b   : > { %319 = vst [vmem:[#allocation1 + $0x10] ss:$2 sm:$0xff] %v307_v5  ;;  %v416_v34 = vand.u32 15, %v1146_v33  ;;  %vm479_vm4 = vcmp.lt.s32.totalorder %v1146_v33, 127  ;;  %v410_v40 = vadd.s32 128, %v1146_v33  ;;  %vm457_vm6 = vcmp.lt.s32.totalorder %v1146_v33, 1 }
  0x1c   : > { %v411_v44 = vadd.s32 256, %v1146_v33  ;;  %vm530_vm8 = vcmp.lt.s32.totalorder %v1146_v33, 112  ;;  %vm579_vm13 = vcmp.lt.s32.totalorder %v1146_v33, 96  ;;  %v640_v33 = vld [vmem:[%s1261_s5] sm:$0xf] }
  0x1d   : > { %vm470_vm5 = vcmp.ne.s32.totalorder %v416_v34, 15  ;;  %v423_v43 = vand.u32 15, %v410_v40  ;;  %vm448_vm10 = vcmp.ne.s32.totalorder %v416_v34, 0 }
  0x1e   : > { %889 = vset.pattern.permute.xlu0 %v984_v6  ;;  %891 = vset.pattern.permute.xlu2 %v985_v7  ;;  %v430_v50 = vand.u32 15, %v411_v44 }
  0x1f   : > { %509 = vperm.xlu0 %889, %v1105_v3   ;;  %534 = vperm.xlu2 %891, %v1105_v3   ;;  %vm449_vm7 = vcmp.ne.s32.totalorder %v423_v43, 0  ;;  %vm471_vm12 = vcmp.ne.s32.totalorder %v423_v43, 15 }
  0x20   : > { %890 = vset.pattern.permute.xlu1 %v986_v8  ;;  %vm450_vm9 = vcmp.ne.s32.totalorder %v430_v50, 0  ;;  %vm472_vm11 = vcmp.ne.s32.totalorder %v430_v50, 15 }
  0x21   : > { %517 = vperm.xlu1 %890, %v1105_v3   ;;  %v320_v10 = vld.sshfl [vmem:[#allocation1] sm:$0xff pattern:$0x75316420]  ;;  %v321_v11 = vld.sshfl [vmem:[#allocation1 + $0x8] sm:$0xff pattern:$0x75316420] }
  0x22   : > { %802 = vmatpush.msk.msra.mxu0 %vm327_vm0, %v320_v10  ;;  %804 = vmatpush.msk.msra.mxu1 %vm327_vm0, %v321_v11  ;;  %v322_v12 = vld.sshfl [vmem:[#allocation1 + $0x10] sm:$0xff pattern:$0x75316420] }
  0x23   : > { %806 = vmatpush.msk.msra.mxu2 %vm327_vm0, %v322_v12  ;;  %803 = vmatmul.msk.f32.vlgmr.msra.gmra.mxu0 %vm323_vm1, %v308_v9 }
  0x24   : > { %805 = vmatmul.msk.f32.vlgmr.msra.gmra.mxu1 %vm323_vm1, %v308_v9  ;;  %807 = vmatmul.msk.f32.vlgmr.msra.gmra.mxu2 %vm323_vm1, %v308_v9 }
  0x27   : > { %892 = vset.pattern.permute.xlu2 %v987_v13  ;;  %893 = vset.pattern.permute.xlu0 %v989_v15 }
  0x28   : > { %550 = vperm.xlu2 %892, %v1105_v3  }
  0x30   : > { %894 = vset.pattern.permute.xlu2 %v988_v14 }
  0x70   : > { %v504_v27 = vpop.permute.xlu2 %503 }
  0x79   : > { %v1142_v28 = vpop.permute.xlu2 %534 }
  0x82   : > { %v1144_v29 = vpop.permute.xlu2 %550 }
  0x88   : > { %v313_v16 = vpop.permute.xlu0 %312 }
  0x8a   : > { %v497_v31 = vpop.permute.xlu1 %496 }
  0x91   : > { %v510_v41 = vpop.permute.xlu0 %509 }
  0x93   : > { %v518_v36 = vpop.permute.xlu1 %517 }
  0xa0   : > { %v351_v17 = vpop.f32.mrf.mxu0 }
  0xa1   : > { %v352_v18 = vadd.f32 %v351_v17, %v313_v16  ;;  %v371_v19 = vpop.f32.mrf.mxu1 }
  0xa2   : > { %v372_v20 = vadd.f32 %v371_v19, %v313_v16 }
  0xa3   : > { %394 = vst [vmem:[#allocation2] sm:$0xff] %v352_v18 }
  0xa4   : > { %402 = vst.msk [vmem:[#allocation2] sm:$0xff] %vm401_vm2, %v990_v21  ;;  %475 = vrot.lane.b32.xlu2 %v372_v20, %s991_s15  ;;  %453 = vrot.lane.b32.xlu1 %v372_v20, %s992_s16  ;;  %v513_v51 = vmul.f32 %v510_v41, %v372_v20 }
  0xa7   : > { %v391_v22 = vpop.f32.mrf.mxu2 }
  0xa8   : > { %v392_v23 = vadd.f32 %v391_v22, %v313_v16 }
  0xaa   : > { %396 = vst [vmem:[#allocation2 + $0x10] sm:$0xff] %v392_v23 }
  0xab   : > { %404 = vst.msk [vmem:[#allocation2 + $0x10] sm:$0xff] %vm403_vm3, %v990_v21  ;;  %v1122_v24 = vld [vmem:[#allocation2] sm:$0xff] }
  0xac   : > { %451 = vrot.lane.b32.xlu0 %v1122_v24, %s992_s16  ;;  %543 = vrot.lane.b32.xlu1 %v372_v20, %s993_s17  ;;  %v512_v63 = vmul.f32 %v510_v41, %v1122_v24 }
  0xad   : > { %473 = vrot.lane.b32.xlu2 %v1122_v24, %s991_s15 }
  0xb2   : > { %v1127_v25 = vld [vmem:[#allocation2 + $0x10] sm:$0xff] }
  0xb4   : > { %541 = vrot.lane.b32.xlu0 %v1122_v24, %s993_s17  ;;  %455 = vrot.lane.b32.xlu1 %v1127_v25, %s992_s16  ;;  %s295_s16 = scalar_lea.vmem [#allocation3], %s800_s30  ;;  %s923_s30 = scalar_lea.hbm %s1263_s7, 16 }
  0xb5   : > { %583 = vperm.xlu2 %894, %v1105_v3  }
  0xbc   : > { %477 = vrot.lane.b32.xlu0 %v1127_v25, %s991_s15  ;;  %590 = vrot.lane.b32.xlu1 %v1122_v24, %s994_s18  ;;  %s711_s15 = scalar_lea.hbm %s1263_s7, %s815_s8 }
  0xbd   : > { %592 = vrot.lane.b32.xlu2 %v372_v20, %s994_s18 }
  0xbe   : > { %896 = vset.pattern.permute.xlu2 %v996_v2 }
  0xc4   : > { %566 = vperm.xlu0 %893, %v1105_v3   ;;  %545 = vrot.lane.b32.xlu1 %v1127_v25, %s993_s17 }
  0xcc   : > { %895 = vset.pattern.permute.xlu0 %v995_v26 }
  0xcd   : > { %599 = vperm.xlu0 %895, %v1105_v3  }
  0xd5   : > { %898 = vset.pattern.permute.xlu0 %v983_v1 }
  0xfe   : > { %v476_v32 = vpop.permute.xlu2 %475 }
 0x107   : > { %v474_v35 = vpop.permute.xlu2 %473 }
 0x108   : > { %v481_v37 = vsel %vm479_vm4, %v474_v35, %v476_v32 }
 0x109   : > { %v489_v38 = vsel %vm470_vm5, %v481_v37, 0.0 }
 0x10a   : > { %v520_v39 = vmul.f32 %v518_v36, %v489_v38  ;;  %606 = vrot.lane.b32.xlu2 %v489_v38, %s994_s18 }
 0x10f   : > { %v584_v17 = vpop.permute.xlu2 %583 }
 0x116   : > { %v454_v42 = vpop.permute.xlu1 %453 }
 0x117   : > { %v593_v18 = vpop.permute.xlu2 %592 }
 0x11e   : > { %v452_v45 = vpop.permute.xlu0 %451  ;;  %v544_v46 = vpop.permute.xlu1 %543 }
 0x11f   : > { %v459_v47 = vsel %vm457_vm6, %v452_v45, %v454_v42 }
 0x120   : > { %v468_v48 = vsel %vm449_vm7, %v459_v47, 0.0 }
 0x121   : > { %526 = vrot.lane.b32.xlu1 %v468_v48, %s993_s17  ;;  %v500_v49 = vmul.f32 %v497_v31, %v468_v48 }
 0x123   : > { %v507_v52 = vadd.f32 %v504_v27, %v500_v49 }
 0x125   : > { %v515_v53 = vadd.f32 %v513_v51, %v507_v52 }
 0x126   : > { %v542_v54 = vpop.permute.xlu0 %541  ;;  %v456_v55 = vpop.permute.xlu1 %455 }
 0x127   : > { %v548_v56 = vsel %vm530_vm8, %v542_v54, %v544_v46  ;;  %v458_v57 = vsel %vm457_vm6, %v454_v42, %v456_v55  ;;  %v460_v58 = vsel %vm457_vm6, %v456_v55, %v452_v45 }
 0x128   : > { %v553_v59 = vmul.f32 %v1144_v29, %v548_v56  ;;  %v469_v60 = vsel %vm450_vm9, %v458_v57, 0.0  ;;  %v467_v61 = vsel %vm448_vm10, %v460_v58, 0.0 }
 0x129   : > { %557 = vrot.lane.b32.xlu1 %v489_v38, %s993_s17  ;;  %528 = vrot.lane.b32.xlu0 %v469_v60, %s993_s17  ;;  %v499_v62 = vmul.f32 %v497_v31, %v467_v61 }
 0x12a   : > { %524 = vrot.lane.b32.xlu2 %v467_v61, %s993_s17 }
 0x12b   : > { %v506_v0 = vadd.f32 %v504_v27, %v499_v62 }
 0x12d   : > { %v514_v4 = vadd.f32 %v512_v63, %v506_v0  ;;  %v641_v63 = vld [vmem:[%s1262_s6] sm:$0xf] }
 0x12e   : > { %v478_v5 = vpop.permute.xlu0 %477  ;;  %v591_v6 = vpop.permute.xlu1 %590 }
 0x12f   : > { %v480_v7 = vsel %vm479_vm4, %v476_v32, %v478_v5  ;;  %v482_v8 = vsel %vm479_vm4, %v478_v5, %v474_v35  ;;  %v522_v9 = vadd.f32 %v520_v39, %v514_v4  ;;  %v597_v45 = vsel %vm579_vm13, %v591_v6, %v593_v18 }
 0x130   : > { %v491_v10 = vsel %vm472_vm11, %v482_v8, 0.0  ;;  %v490_v11 = vsel %vm471_vm12, %v480_v7, 0.0 }
 0x131   : > { %575 = vrot.lane.b32.xlu1 %v468_v48, %s994_s18  ;;  %561 = vrot.lane.b32.xlu0 %v491_v10, %s993_s17  ;;  %v521_v12 = vmul.f32 %v518_v36, %v490_v11 }
 0x132   : > { %559 = vrot.lane.b32.xlu2 %v490_v11, %s993_s17  ;;  %s713_s17 = sshll.u32 %s295_s16, 4  ;;  %s714_s17 = int_to_ptr.vmem [resolvable:$true] %s713_s17 }
 0x133   : > { %v523_v13 = vadd.f32 %v521_v12, %v515_v53 }
 0x136   : > { %v546_v14 = vpop.permute.xlu1 %545  ;;  %v567_v20 = vpop.permute.xlu0 %566 }
 0x137   : > { %v547_v15 = vsel %vm530_vm8, %v544_v46, %v546_v14 }
 0x138   : > { %v554_v16 = vmul.f32 %v1144_v29, %v547_v15 }
 0x139   : > { %577 = vrot.lane.b32.xlu1 %v469_v60, %s994_s18  ;;  %594 = vrot.lane.b32.xlu0 %v1127_v25, %s994_s18 }
 0x13a   : > { %573 = vrot.lane.b32.xlu2 %v467_v61, %s994_s18 }
 0x13f   : > { %v600_v22 = vpop.permute.xlu0 %599 }
 0x141   : > { %608 = vrot.lane.b32.xlu1 %v490_v11, %s994_s18 }
 0x142   : > { %615 = vperm.xlu2 %896, %v1105_v3  }
 0x149   : > { %610 = vrot.lane.b32.xlu1 %v491_v10, %s994_s18  ;;  %s715_s18 = sshll.u32 %s711_s15, 4  ;;  %s716_s18 = int_to_ptr.hbm [resolvable:$true] %s715_s18 }
 0x14a   : > { %897 = vset.pattern.permute.xlu2 %v983_v1  ;;  %s917_s19 = sshra.s32 %s716_s18, 4  ;;  %s918_s19 = int_to_ptr.hbm [resolvable:$true] %s917_s19 }
 0x14b   : > { %644 = vperm.xlu2 %897, %v641_v63   ;;  %s919_s20 = scalar_lea.hbm %s918_s19, 8  ;;  %p924_p1 = scmp.lt.s32.totalorder %s918_s19, %s1263_s7 }
 0x14c   : > { %p920_p12 = scmp.ne.s32.totalorder %s918_s19, %s919_s20  ;;  %p925_p2 = scmp.lt.s32.totalorder %s923_s30, %s919_s20 }
 0x14e   : > { %p921_p13 = pnand %p920_p12, %p1077_p4  ;;  %p926_p3 = por %p925_p2, %p924_p1 }
 0x150   : > { %p922_p0 = pneg %p921_p13 }
 0x152   : > { %p927_p5 = pnand %p926_p3, %p922_p0 }
 0x164   : > { %v607_v19 = vpop.permute.xlu2 %606 }
 0x184   : > { %v525_v21 = vpop.permute.xlu2 %524 }
 0x18c   : > { %v560_v27 = vpop.permute.xlu2 %559 }
 0x193   : > { %v527_v23 = vpop.permute.xlu1 %526 }
 0x194   : > { %v532_v24 = vsel %vm530_vm8, %v525_v21, %v527_v23  ;;  %v574_v38 = vpop.permute.xlu2 %573 }
 0x195   : > { %v537_v25 = vmul.f32 %v1142_v28, %v532_v24 }
 0x197   : > { %v539_v26 = vadd.f32 %v537_v25, %v522_v9 }
 0x199   : > { %v555_v29 = vadd.f32 %v553_v59, %v539_v26 }
 0x19b   : > { %v558_v3 = vpop.permute.xlu1 %557  ;;  %v529_v30 = vpop.permute.xlu0 %528 }
 0x19c   : > { %v564_v1 = vsel %vm530_vm8, %v558_v3, %v560_v27  ;;  %v531_v31 = vsel %vm530_vm8, %v527_v23, %v529_v30  ;;  %v616_v57 = vpop.permute.xlu2 %615 }
 0x19d   : > { %v569_v32 = vmul.f32 %v567_v20, %v564_v1  ;;  %v538_v34 = vmul.f32 %v1142_v28, %v531_v31  ;;  %v602_v28 = vmul.f32 %v600_v22, %v597_v45 }
 0x19f   : > { %v571_v35 = vadd.f32 %v569_v32, %v555_v29  ;;  %v540_v36 = vadd.f32 %v538_v34, %v523_v13 }
 0x1a1   : > { %v556_v37 = vadd.f32 %v554_v16, %v540_v36 }
 0x1a3   : > { %v576_v39 = vpop.permute.xlu1 %575  ;;  %v562_v40 = vpop.permute.xlu0 %561 }
 0x1a4   : > { %v581_v41 = vsel %vm579_vm13, %v574_v38, %v576_v39  ;;  %v563_v42 = vsel %vm530_vm8, %v560_v27, %v562_v40 }
 0x1a5   : > { %v586_v43 = vmul.f32 %v584_v17, %v581_v41  ;;  %v570_v44 = vmul.f32 %v567_v20, %v563_v42  ;;  %v645_v23 = vpop.permute.xlu2 %644 }
 0x1a7   : > { %v588_v46 = vadd.f32 %v586_v43, %v571_v35  ;;  %v572_v47 = vadd.f32 %v570_v44, %v556_v37 }
 0x1a9   : > { %v604_v48 = vadd.f32 %v602_v28, %v588_v46 }
 0x1ab   : > { %v578_v49 = vpop.permute.xlu1 %577  ;;  %v595_v50 = vpop.permute.xlu0 %594 }
 0x1ac   : > { %v580_v51 = vsel %vm579_vm13, %v576_v39, %v578_v49  ;;  %v596_v52 = vsel %vm579_vm13, %v593_v18, %v595_v50 }
 0x1ad   : > { %v587_v53 = vmul.f32 %v584_v17, %v580_v51  ;;  %v603_v55 = vmul.f32 %v600_v22, %v596_v52 }
 0x1af   : > { %v589_v54 = vadd.f32 %v587_v53, %v572_v47 }
 0x1b1   : > { %v605_v56 = vadd.f32 %v603_v55, %v589_v54 }
 0x1b3   : > { %v609_v58 = vpop.permute.xlu1 %608 }
 0x1b4   : > { %v613_v59 = vsel %vm579_vm13, %v607_v19, %v609_v58 }
 0x1b5   : > { %v618_v60 = vmul.f32 %v616_v57, %v613_v59 }
 0x1b7   : > { %v620_v61 = vadd.f32 %v618_v60, %v604_v48 }
 0x1b9   : > { %v622_v62 = vmul.f32 %v620_v61, %v620_v61 }
 0x1bb   : > { %v611_v0 = vpop.permute.xlu1 %610  ;;  %v624_v2 = vmul.f32 %v622_v62, %v620_v61 }
 0x1bc   : > { %v612_v4 = vsel %vm579_vm13, %v609_v58, %v611_v0 }
 0x1bd   : > { %v619_v5 = vmul.f32 %v616_v57, %v612_v4  ;;  %v626_v6 = vmul.f32 0.044715, %v624_v2 }
 0x1bf   : > { %v621_v7 = vadd.f32 %v619_v5, %v605_v56  ;;  %v628_v8 = vadd.f32 %v626_v6, %v620_v61 }
 0x1c1   : > { %v630_v9 = vmul.f32 0.7978846, %v628_v8  ;;  %v623_v10 = vmul.f32 %v621_v7, %v621_v7 }
 0x1c3   : > { %899 = vtanh.f32 %v630_v9  ;;  %v625_v11 = vmul.f32 %v623_v10, %v621_v7 }
 0x1c5   : > { %v627_v12 = vmul.f32 0.044715, %v625_v11 }
 0x1c7   : > { %v629_v13 = vadd.f32 %v627_v12, %v621_v7 }
 0x1c9   : > { %v900_v14 = vpop.eup %899  ;;  %v631_v15 = vmul.f32 0.7978846, %v629_v13 }
 0x1ca   : > { %v634_v16 = vadd.f32 1.0, %v900_v14 }
 0x1cb   : > { %901 = vtanh.f32 %v631_v15 }
 0x1cc   : > { %v636_v17 = vmul.f32 0.5, %v634_v16 }
 0x1ce   : > { %v638_v18 = vmul.f32 %v636_v17, %v620_v61 }
 0x1d0   : > { %666 = vmatpush.msra.mxu3 %v638_v18 }
 0x1d1   : > { %v902_v19 = vpop.eup %901  ;;  %808 = vmatmul.msk.f32.vlgmr.msra.gmra.mxu3 %vm647_vm14, %v640_v33 }
 0x1d2   : > { %v635_v20 = vadd.f32 1.0, %v902_v19 }
 0x1d4   : > { %v637_v21 = vmul.f32 0.5, %v635_v20 }
 0x1d6   : > { %v639_v22 = vmul.f32 %v637_v21, %v621_v7 }
 0x1d8   : > { %686 = vmatpush.msrb.mxu0 %v639_v22 }
 0x1d9   : > { %809 = vmatmul.msk.f32.vlgmr.msrb.gmra.mxu0 %vm647_vm14, %v640_v33 }
 0x254   : > { %v668_v25 = vpop.f32.mrf.mxu3 }
 0x255   : > { %v669_v29 = vadd.f32 %v668_v25, %v645_v23 }
 0x256   : > { %v688_v24 = vpop.f32.mrf.mxu0 }
 0x257   : > { %v689_v26 = vadd.f32 %v688_v24, %v645_v23 }
 0x259   : > { %v693_v27 = vrot.slane %v689_v26, 4 }
 0x25b   : > { %v694_v3 = vsel %vm327_vm0, %v669_v29, %v693_v27 }
 0x25c   : > { %696 = vst [vmem:[%s295_s16] sm:$0xff] %v694_v3 }
 0x25d   : > { %930 = shalt.err (!%p927_p5)
}
 0x25e   : > { %817 = dma.vmem_to_hbm [thread:$0]  (%p1077_p4), %s714_s17, 128, %s716_s18, %s698_s27  }
 0x25f PF: > { %p823_p6 = scmp.ge.s32.totalorder %s981_s29, 2  ;;  %s727_s23 = sand.u32 1, %s961_s24  }
 0x260   : > { %s728_s12 = scalar_lea.sflag [#allocation4], %s727_s23 }
 0x261   : > { %p820_p7 = pnand %p823_p6, %p1084_p8 }
 0x263   : > { %p821_p9 = pneg %p820_p7 }
 0x265   : > { %956 = dma.done.wait (%p821_p9), %s728_s12, 128  }
 0x266   : > { %958 = vsyncadd (%p821_p9), %s728_s12, 4294967168  ;;  %s20_s29 = sadd.s32 1, %s981_s29   ;;  %s1266_s24 = smov %s965_s25 }
 0x267   : > { %p17_p10 = scmp.ge.s32.totalorder %s20_s29, 4   ;;  %s1267_s25 = smov %s969_s26 }
 0x268   : > { %s1268_s26 = smov %s1090_s14  ;;  %s1269_s27 = smov %s977_s28 }
 0x269   : > { %s1270_s28 = smov %s1272_s9  ;;  %19 = sbr.rel (!%p17_p10) target bundleno = 4 (0x4), region = 88 }
 0x26e   :  { %734 = vsyncpa [#allocation4], 1 }
 0x26f   :  { %736 = vsyncpa [#allocation4 + $0x1], 1 }

</bundles_post_ra>
